<compile_context>
chip_gen: v5e
topology: v5e:2x2
jax: 0.10.0
libtpu: 0.0.40
codegen_flags: <defaults>
</compile_context>

<pallas_src>
import jax
import jax.numpy as jnp
from jax.experimental import pallas as pl
from jax.experimental.pallas import tpu as pltpu


def _massage_kernel(x1_ref, x2_ref, w1_ref, b1_ref, w2_ref, b2_ref, o_ref):
    x1 = x1_ref[...]  # residual path keeps the original dtype / precision
    # Two MXU matmuls with f32 accumulation. Operands may be bf16; x1 is cast
    # once for the dot, x2/weights already live in HBM at the compute dtype.
    h1 = jnp.dot(x1.astype(w1_ref.dtype), w1_ref[...],
                 preferred_element_type=jnp.float32) + b1_ref[...]
    h2 = jnp.dot(x2_ref[...].astype(w2_ref.dtype), w2_ref[...],
                 preferred_element_type=jnp.float32) + b2_ref[...]
    # VPU epilogue entirely in f32: per-branch ReLU + branch add + residual add.
    hidden = jnp.maximum(h1, 0.0) + jnp.maximum(h2, 0.0)
    o_ref[...] = (x1.astype(jnp.float32) + hidden).astype(o_ref.dtype)


def _round_up(x, m):
    return ((x + m - 1) // m) * m


def _itemsize(dt):
    return jnp.dtype(dt).itemsize


def _vmem_limit_bytes():
    """Generation-aware VMEM limit (v5e/v6e: 128 MiB, v7x: 64 MiB physical)."""
    cap = 64 << 20  # conservative fallback: assume v7x-sized VMEM
    try:
        info = pltpu.get_tpu_info()
        cap = int(getattr(info, "vmem_capacity_bytes", cap) or cap)
    except Exception:
        pass  # hardware query only; fall back to the conservative cap
    # Leave >= 8 MiB / ~15% headroom for Mosaic internal scratch + temporaries.
    return max(32 << 20, min(int(cap * 0.85), cap - (8 << 20)))


def _choose_tile_m(n, stream_per_row, vmem_per_row, param_vmem, vmem_limit):
    """Pick a row tile: >= ~4 MiB of activation traffic/step, fits VMEM."""
    tile = max(256, (4 << 20) // max(stream_per_row, 1))
    budget = vmem_limit - param_vmem - (4 << 20)   # extra compiler headroom
    if budget > 0:
        tile = min(tile, budget // max(vmem_per_row, 1))
    tile = max(8, (int(tile) // 8) * 8)            # sublane-aligned
    return int(min(tile, _round_up(n, 8)))          # tiny N -> single block


def massage_apply(input1, input2, w1, b1, w2, b2, *, tile_m=None,
                  compute_dtype=jnp.bfloat16, out_dtype=None,
                  donate_input1=False):
    """Fused MassageApply forward.

    input1/input2: (N, D); w1/w2: (D, D) stored (in, out) (already transposed
    vs nn.Linear.weight); b1/b2: (1, D).
    compute_dtype: matmul operand dtype (default bf16; pass jnp.float32 for
    f32-exact parity). Bias add, ReLU and the residual add always run in f32.
    Note: with bf16 operands both matmul branches lose a little precision
    (residual path stays f32).
    """
    N, D = input1.shape
    out_dtype = input1.dtype if out_dtype is None else jnp.dtype(out_dtype)

    # Lane-pad D to a multiple of 128 (only if needed) so stores are lane-dense.
    d_pad = _round_up(D, 128)
    if d_pad != D:
        cpad = d_pad - D
        input1 = jnp.pad(input1, ((0, 0), (0, cpad)))
        input2 = jnp.pad(input2, ((0, 0), (0, cpad)))
        w1 = jnp.pad(w1, ((0, cpad), (0, cpad)))
        w2 = jnp.pad(w2, ((0, cpad), (0, cpad)))
        b1 = jnp.pad(b1, ((0, 0), (0, cpad)))
        b2 = jnp.pad(b2, ((0, 0), (0, cpad)))

    if compute_dtype is not None:
        compute_dtype = jnp.dtype(compute_dtype)
        # Weights and the matmul-only activation live in HBM at the compute
        # dtype (halves their HBM traffic when bf16, full-rate MXU path).
        # input1 keeps its original dtype because the residual add needs it.
        w1 = w1.astype(compute_dtype)
        w2 = w2.astype(compute_dtype)
        input2 = input2.astype(compute_dtype)

    vmem_limit = _vmem_limit_bytes()
    stream = _itemsize(input1.dtype) + _itemsize(input2.dtype) + _itemsize(out_dtype)
    stream_per_row = d_pad * stream
    # double-buffered act tiles (in+in+out) + ~3 f32 intermediates per row
    vmem_per_row = d_pad * (2 * stream + 3 * 4)
    # 2 weights + 2 biases, default double-buffered (fetched once: constant idx)
    param_vmem = 2 * (2 * d_pad * d_pad * _itemsize(w1.dtype) + 2 * d_pad * 4)

    if tile_m is None:
        tile_m = _choose_tile_m(N, stream_per_row, vmem_per_row, param_vmem,
                                vmem_limit)
    else:
        tile_m = max(8, (int(tile_m) // 8) * 8)
        tile_m = min(tile_m, _round_up(N, 8))

    grid = (int(pl.cdiv(N, tile_m)),)

    act_spec = pl.BlockSpec((tile_m, d_pad), lambda i: (i, 0))
    w_spec = pl.BlockSpec((d_pad, d_pad), lambda i: (0, 0))
    b_spec = pl.BlockSpec((1, d_pad), lambda i: (0, 0))

    cost = pl.CostEstimate(
        flops=2 * 2 * N * d_pad * d_pad,
        transcendentals=0,
        bytes_accessed=(N * stream_per_row
                        + 2 * d_pad * d_pad * _itemsize(w1.dtype)
                        + 4 * d_pad * 4),
    )

    io_aliases = {}
    if donate_input1 and d_pad == D and out_dtype == input1.dtype:
        io_aliases = {0: 0}

    call = pl.pallas_call(
        _massage_kernel,
        out_shape=jax.ShapeDtypeStruct((N, d_pad), out_dtype),
        grid_spec=pltpu.PrefetchScalarGridSpec(
            num_scalar_prefetch=0,
            grid=grid,
            in_specs=[act_spec, act_spec, w_spec, b_spec, w_spec, b_spec],
            out_specs=act_spec,
        ),
        compiler_params=pltpu.CompilerParams(
            # Row axis is fully independent -> megacore-shardable (2 TCs on v7x).
            dimension_semantics=("parallel",),
            vmem_limit_bytes=int(vmem_limit),
        ),
        cost_estimate=cost,
        input_output_aliases=io_aliases,
    )
    out = call(input1, input2, w1, b1, w2, b2)
    return out[:, :D] if d_pad != D else out


def reference(input1, input2, w1, b1, w2, b2):
    h1 = jnp.maximum(input1 @ w1 + b1, 0.0)
    h2 = jnp.maximum(input2 @ w2 + b2, 0.0)
    return input1 + h1 + h2


if __name__ == "__main__":
    D = 128   # MLP_HEAD_DIM (small, lane-aligned test size)
    N = 40    # ROI rows; deliberately NOT a multiple of the small test tile

    key = jax.random.PRNGKey(0)
    k1, k2, k3, k4, k5, k6 = jax.random.split(key, 6)
    input1 = jax.random.normal(k1, (N, D), dtype=jnp.float32)
    input2 = jax.random.normal(k2, (N, D), dtype=jnp.float32)

    scale = 1.0 / jnp.sqrt(jnp.float32(D))
    w1 = jax.random.uniform(k3, (D, D), jnp.float32, -scale, scale)  # (in, out)
    b1 = jax.random.uniform(k4, (1, D), jnp.float32, -scale, scale)
    w2 = jax.random.uniform(k5, (D, D), jnp.float32, -scale, scale)
    b2 = jax.random.uniform(k6, (1, D), jnp.float32, -scale, scale)

    ref = reference(input1, input2, w1, b1, w2, b2)

    # 1) f32-exact path with a small forced tile: exercises a multi-step grid
    #    with a ragged (Pallas-masked) last row block and no wrapper padding.
    out_f32 = jax.block_until_ready(
        massage_apply(input1, input2, w1, b1, w2, b2,
                      tile_m=16, compute_dtype=jnp.float32))
    assert out_f32.shape == (N, D)
    assert jnp.allclose(out_f32, ref, atol=1e-4, rtol=1e-4), "f32 mismatch"

    # 2) Default production path: bf16 matmul operands, f32 accumulation and
    #    epilogue, auto-sized tile (single block at this tiny N).
    out_def = jax.block_until_ready(
        massage_apply(input1, input2, w1, b1, w2, b2))
    assert out_def.shape == (N, D)
    assert jnp.allclose(out_def, ref, atol=5e-2, rtol=5e-2), "bf16 mismatch"

    print("KERNEL_OK")
</pallas_src>

<mosaic_0001>
module attributes {stable_mosaic.version = 11 : i64} {
  func.func @_massage_kernel(%arg0: i32, %arg1: memref<16x128xf32, #tpu.memory_space<vmem>>, %arg2: memref<16x128xf32, #tpu.memory_space<vmem>>, %arg3: memref<128x128xf32, #tpu.memory_space<vmem>>, %arg4: memref<1x128xf32, #tpu.memory_space<vmem>>, %arg5: memref<128x128xf32, #tpu.memory_space<vmem>>, %arg6: memref<1x128xf32, #tpu.memory_space<vmem>>, %arg7: memref<16x128xf32, #tpu.memory_space<vmem>>) attributes {dimension_semantics = [#tpu.dimension_semantics<parallel>], iteration_bounds = array<i64: 3>, scalar_prefetch = 0 : i64, scratch_operands = 0 : i64, tpu.core_type = #tpu.core_type<tc>, window_params = [{transform_indices = @transform_0, window_bounds = array<i64: 16, 128>}, {transform_indices = @transform_1, window_bounds = array<i64: 16, 128>}, {pipeline_mode = #tpu.pipeline_mode<synchronous>, transform_indices = @transform_2, window_bounds = array<i64: 128, 128>}, {pipeline_mode = #tpu.pipeline_mode<synchronous>, transform_indices = @transform_3, window_bounds = array<i64: 1, 128>}, {pipeline_mode = #tpu.pipeline_mode<synchronous>, transform_indices = @transform_4, window_bounds = array<i64: 128, 128>}, {pipeline_mode = #tpu.pipeline_mode<synchronous>, transform_indices = @transform_5, window_bounds = array<i64: 1, 128>}, {transform_indices = @transform_6, window_bounds = array<i64: 16, 128>}]} {
    %c0 = arith.constant 0 : index
    %c0_0 = arith.constant 0 : index
    %0 = vector.load %arg1[%c0, %c0_0] : memref<16x128xf32, #tpu.memory_space<vmem>>, vector<16x128xf32>
    %c0_1 = arith.constant 0 : index
    %c0_2 = arith.constant 0 : index
    %1 = vector.load %arg3[%c0_1, %c0_2] : memref<128x128xf32, #tpu.memory_space<vmem>>, vector<128x128xf32>
    %cst = arith.constant dense<0.000000e+00> : vector<16x128xf32>
    %2 = tpu.matmul %0, %1, %cst {dimension_numbers = #tpu.dot_dimension_numbers<[1], [0], [0], [1], [0, 0, 1, 1], [], []>} : vector<16x128xf32>, vector<128x128xf32>, vector<16x128xf32> -> vector<16x128xf32>
    %c0_3 = arith.constant 0 : index
    %c0_4 = arith.constant 0 : index
    %3 = vector.load %arg4[%c0_3, %c0_4] : memref<1x128xf32, #tpu.memory_space<vmem>>, vector<1x128xf32>
    %4 = vector.broadcast %3 : vector<1x128xf32> to vector<16x128xf32>
    %5 = arith.addf %2, %4 : vector<16x128xf32>
    %c0_5 = arith.constant 0 : index
    %c0_6 = arith.constant 0 : index
    %6 = vector.load %arg2[%c0_5, %c0_6] : memref<16x128xf32, #tpu.memory_space<vmem>>, vector<16x128xf32>
    %c0_7 = arith.constant 0 : index
    %c0_8 = arith.constant 0 : index
    %7 = vector.load %arg5[%c0_7, %c0_8] : memref<128x128xf32, #tpu.memory_space<vmem>>, vector<128x128xf32>
    %cst_9 = arith.constant dense<0.000000e+00> : vector<16x128xf32>
    %8 = tpu.matmul %6, %7, %cst_9 {dimension_numbers = #tpu.dot_dimension_numbers<[1], [0], [0], [1], [0, 0, 1, 1], [], []>} : vector<16x128xf32>, vector<128x128xf32>, vector<16x128xf32> -> vector<16x128xf32>
    %c0_10 = arith.constant 0 : index
    %c0_11 = arith.constant 0 : index
    %9 = vector.load %arg6[%c0_10, %c0_11] : memref<1x128xf32, #tpu.memory_space<vmem>>, vector<1x128xf32>
    %10 = vector.broadcast %9 : vector<1x128xf32> to vector<16x128xf32>
    %11 = arith.addf %8, %10 : vector<16x128xf32>
    %cst_12 = arith.constant 0.000000e+00 : f32
    %12 = vector.broadcast %cst_12 : f32 to vector<16x128xf32>
    %13 = arith.maximumf %5, %12 : vector<16x128xf32>
    %cst_13 = arith.constant 0.000000e+00 : f32
    %14 = vector.broadcast %cst_13 : f32 to vector<16x128xf32>
    %15 = arith.maximumf %11, %14 : vector<16x128xf32>
    %16 = arith.addf %13, %15 : vector<16x128xf32>
    %17 = arith.addf %0, %16 : vector<16x128xf32>
    %c0_14 = arith.constant 0 : index
    %c0_15 = arith.constant 0 : index
    %18 = vector.load %arg7[%c0_14, %c0_15] : memref<16x128xf32, #tpu.memory_space<vmem>>, vector<16x128xf32>
    tpu.vector_store %arg7[%c0_14, %c0_15], %17 {strides = array<i32>} : memref<16x128xf32, #tpu.memory_space<vmem>>, vector<16x128xf32>,
    return
  }
  func.func @transform_0(%arg0: i32) -> (i32, i32) {
    %c0_i32 = arith.constant 0 : i32
    %c0_i32_0 = arith.constant 0 : i32
    return %arg0, %c0_i32 : i32, i32
  }
  func.func @transform_1(%arg0: i32) -> (i32, i32) {
    %c0_i32 = arith.constant 0 : i32
    %c0_i32_0 = arith.constant 0 : i32
    return %arg0, %c0_i32 : i32, i32
  }
  func.func @transform_2(%arg0: i32) -> (i32, i32) {
    %c0_i32 = arith.constant 0 : i32
    %c0_i32_0 = arith.constant 0 : i32
    %c0_i32_1 = arith.constant 0 : i32
    return %c0_i32, %c0_i32_0 : i32, i32
  }
  func.func @transform_3(%arg0: i32) -> (i32, i32) {
    %c0_i32 = arith.constant 0 : i32
    %c0_i32_0 = arith.constant 0 : i32
    %c0_i32_1 = arith.constant 0 : i32
    return %c0_i32, %c0_i32_0 : i32, i32
  }
  func.func @transform_4(%arg0: i32) -> (i32, i32) {
    %c0_i32 = arith.constant 0 : i32
    %c0_i32_0 = arith.constant 0 : i32
    %c0_i32_1 = arith.constant 0 : i32
    return %c0_i32, %c0_i32_0 : i32, i32
  }
  func.func @transform_5(%arg0: i32) -> (i32, i32) {
    %c0_i32 = arith.constant 0 : i32
    %c0_i32_0 = arith.constant 0 : i32
    %c0_i32_1 = arith.constant 0 : i32
    return %c0_i32, %c0_i32_0 : i32, i32
  }
  func.func @transform_6(%arg0: i32) -> (i32, i32) {
    %c0_i32 = arith.constant 0 : i32
    %c0_i32_0 = arith.constant 0 : i32
    return %arg0, %c0_i32 : i32, i32
  }
}

</mosaic_0001>

<bundles_post_ra>
// kernel: tpu_custom_call.1
= control target key start
LH: loop header
LB: loop body
LE: loop exit
PB: predicated region body
PF: predicated region fallthrough
CT: control target
= control target key end

     0   :  { %s1305_s0 = inlined_call_operand.hbm [shape: f32[40,128], index: 0, kind: input, shape index: {}]   ;;  %s1306_s1 = inlined_call_operand.hbm [shape: f32[40,128], index: 1, kind: input, shape index: {}]   ;;  %s1307_s2 = inlined_call_operand.hbm [shape: f32[128,128], index: 2, kind: input, shape index: {}]   ;;  %s1308_s3 = inlined_call_operand.vmem [shape: f32[1,128], index: 3, kind: input, shape index: {}]   ;;  %s1309_s4 = inlined_call_operand.hbm [shape: f32[128,128], index: 4, kind: input, shape index: {}]   ;;  %s1310_s5 = inlined_call_operand.vmem [shape: f32[1,128], index: 5, kind: input, shape index: {}]   ;;  %s1311_s6 = inlined_call_operand.hbm [shape: f32[40,128], index: 6, kind: output, shape index: {}]  }
   0x1   :  { %1314 = sst [smem:[#allocation17_spill]] %s1307_s2 }
   0x2   :  { %1315 = sst [smem:[#allocation18_spill]] %s1309_s4 }
   0x3   :  { %11 = vsyncpa [#allocation3], 0 }
   0x4   :  { %13 = vsyncpa [#allocation3 + $0x1], 0 }
   0x5   :  { %14 = vsyncpa [#allocation6], 0 }
   0x6   :  { %16 = vsyncpa [#allocation6 + $0x1], 0 }
   0x7   :  { %17 = vsyncpa [#allocation9], 0 }
   0x8   :  { %18 = vsyncpa [#allocation4], 0 }
   0x9   :  { %20 = vsyncpa [#allocation4 + $0x1], 0  ;;  %s1031_s21 = smov 0   ;;  %s1033_s22 = smov 0  }
   0xa   :  { %s1035_s23 = smov 0   ;;  %s1037_s24 = smov 0  }
   0xb LB: > { %s1052_s25 = sadd.s32 4294967295, %s981_s24   ;;  %s614_s26 = sadd.s32 4294967294, %s981_s24   ;;  %s981_s24 = sphi %s1037_s24, %s1338_s24   ;;  %s977_s23 = sphi %s1035_s23, %s1337_s23   ;;  %s973_s22 = sphi %s1033_s22, %s1336_s22   ;;  %s969_s21 = sphi %s1031_s21, %s1335_s21  }
   0xc   : > { %s1056_s27 = sadd.s32 1, %s981_s24   ;;  %s33_s28 = sadd.s32 1, %s977_s23 }
   0xd   : > { %s30_s29 = ssub.s32 %s981_s24, %s1056_s27  ;;  %p40_p0 = scmp.ne.s32.totalorder %s977_s23, %s973_s22 }
   0xe   : > { %p31_p1 = scmp.eq.s32.totalorder %s30_s29, 0  ;;  %p41_p2 = scmp.eq.s32.totalorder %s981_s24, 0 }
   0xf   : > { %p46_p3 = scmp.ne.s32.totalorder %s973_s22, %s969_s21  ;;  %p1313_p4 = scmp.eq.s32.totalorder %s1052_s25, 0 }
  0x10   : > { %s1068_s30 = scalar_select %p31_p1, %s977_s23, %s33_s28  }
  0x11   : > { %p1070_p5 = por %p41_p2, %p40_p0  ;;  %p1076_p6 = por %p1313_p4, %p46_p3 }
  0x12   : > { %1316 = sst [smem:[#allocation16_spill]] %s1068_s30  ;;  %p180_p7 = scmp.eq.s32.totalorder %s1052_s25, 2 }
  0x13   : > { %p186_p8 = scmp.eq.s32.totalorder %s614_s26, 2  ;;  %p615_p9 = scmp.ge.s32.totalorder %s981_s24, 1 }
  0x14   : > { %p193_p10 = scmp.lt.s32.totalorder %s981_s24, 4  ;;  %p1083_p11 = por %p180_p7, %p40_p0 }
  0x15   : > { %p1087_p12 = por %p186_p8, %p46_p3  ;;  %s1322_s2 = sld [smem:[#allocation17_spill]] }
  0x16   : > { %s1319_s9 = scalar_select %p1083_p11, 1, 0 }
  0x17   : > { %s1320_s10 = scalar_select %p1087_p12, 1, 0 }
  0x18   : > { %p1091_p13 = pnand %p615_p9, %p193_p10  ;;  %s983_s15 = smov [#allocation7]  }
  0x19   : > { %s206_s16 = sshll.u32 %s983_s15, 4  ;;  %s1323_s4 = sld [smem:[#allocation18_spill]]  ;;  %s207_s16 = int_to_ptr.vmem [resolvable:$true] %s206_s16 }
  0x1a   : > { %p694_p1 = pneg %p1091_p13  ;;  %s984_s20 = smov 128  }
  0x1b   : > { %s204_s14 = sshll.u32 %s1322_s2, 4  ;;  %s985_s26 = smov 8   ;;  %s205_s14 = int_to_ptr.hbm [resolvable:$true] %s204_s14 }
  0x1c   : > { %p695_p0 = pnand %p694_p1, %p1313_p4  ;;  %s986_s28 = smov [#allocation8]  }
  0x1d   : > { %s223_s29 = sshll.u32 %s986_s28, 4  ;;  %p618_p2 = scmp.ge.s32.totalorder %s981_s24, 3  ;;  %s224_s29 = int_to_ptr.vmem [resolvable:$true] %s223_s29 }
  0x1e   : > { %697 = dma.hbm_to_vmem [thread:$0]  (!%p695_p0), %s205_s14, 2048, %s207_s16, [#allocation6], %s984_s20, %s984_s20, %s985_s26  }
  0x1f   : > { %s221_s19 = sshll.u32 %s1323_s4, 4  ;;  %236 = sbr.rel (%p618_p2) target bundleno = 109 (0x6d), region = 32  ;;  %s222_s19 = int_to_ptr.hbm [resolvable:$true] %s221_s19 }
  0x20   : > { %700 = dma.hbm_to_vmem [thread:$0]  (!%p695_p0), %s222_s19, 2048, %s224_s29, [#allocation9], %s984_s20, %s984_s20, %s985_s26  }
  0x24   : > { %239 = sbr.rel (!%p1070_p5) target bundleno = 73 (0x49), region = 36  ;;  %s240_s12 = sand.u32 (%p1070_p5), 1, %s977_s23  }
  0x25   : > { %s620_s13 = sshll.u32 (%p1070_p5), %s981_s24, 1  ;;  %s619_s15 = sshll.u32 (%p1070_p5), %s240_s12, 4 }
  0x26   : > { %s246_s17 = ssub.s32 (%p1070_p5), 5, %s620_s13  ;;  %s1113_s19 = scalar_lea.sflag (%p1070_p5), [#allocation3], %s240_s12 }
  0x27   : > { %p247_p3 = scmp.lt.s32.totalorder (%p1070_p5), %s246_s17, 2  ;;  %s244_s20 = scalar_lea.vmem (%p1070_p5), [#allocation2], %s619_s15 }
  0x29   : > { %s1340_s17 = smov (!%p247_p3, %s246_s17), 2 }
  0x2a   : > { %s621_s14 = sshll.u32 %s1340_s17, 3 }
  0x2b   : > { %s250_s16 = ssub.s32 16, %s621_s14 }
  0x2c   : > { %s251_s18 = sshll.u32 %s250_s16, 4 }
  0x2d   : > { %252 = vsyncadd %s1113_s19, %s251_s18  ;;  %p1116_p7 = scmp.ne.s32.totalorder %s621_s14, 0  ;;  %s648_s28 = sshll.u32 %s981_s24, 4 }
  0x2e   : > { %s255_s2 = scalar_lea.hbm %s1305_s0, %s648_s28  ;;  %s1124_s4 = sshll.u32 %s244_s20, 4  ;;  %s260_s4 = int_to_ptr.vmem [resolvable:$true] %s1124_s4 }
  0x2f   : > { %s257_s12 = sshll.u32 %s255_s2, 4  ;;  %s1312_s15 = sshll.u32 %s1340_s17, 7  ;;  %s1127_s12 = int_to_ptr.hbm [resolvable:$true] %s257_s12 }
  0x30   : > { %s814_s16 = sshra.s32 %s1127_s12, 4  ;;  %s816_s14 = sshrl.u32 %s1312_s15, 4  ;;  %s815_s16 = int_to_ptr.hbm [resolvable:$true] %s814_s16 }
  0x31   : > { %s821_s18 = scalar_lea.hbm %s815_s16, %s816_s14  ;;  %s825_s20 = scalar_lea.hbm %s1305_s0, 40 }
  0x32   : > { %p822_p8 = scmp.ne.s32.totalorder %s815_s16, %s821_s18  ;;  %p826_p1 = scmp.lt.s32.totalorder %s815_s16, %s1305_s0 }
  0x33   : > { %p827_p0 = scmp.lt.s32.totalorder %s825_s20, %s821_s18 }
  0x34   : > { %p823_p9 = pnand %p822_p8, %p1116_p7 }
  0x35   : > { %p828_p2 = por %p827_p0, %p826_p1 }
  0x36   : > { %p824_p10 = pneg %p823_p9 }
  0x38   : > { %p829_p3 = pnand %p828_p2, %p824_p10 }
  0x3a   : > { %832 = shalt.err (!%p829_p3)
}
  0x3b   : > { %s833_s15 = sshra.s32 %s260_s4, 4  ;;  %s987_s29 = smov [#allocation2]   ;;  %s834_s15 = int_to_ptr.vmem [resolvable:$true] %s833_s15 }
  0x3c   : > { %s840_s30 = scalar_lea.vmem %s834_s15, %s816_s14  ;;  %s844_s28 = scalar_lea.vmem %s987_s29, 32 }
  0x3d   : > { %p841_p8 = scmp.ne.s32.totalorder %s834_s15, %s840_s30  ;;  %p846_p12 = scmp.lt.s32.totalorder %s844_s28, %s840_s30 }
  0x3f   : > { %p842_p9 = pnand %p841_p8, %p1116_p7 }
  0x41   : > { %p843_p4 = pneg %p842_p9 }
  0x43   : > { %p848_p11 = pnand %p846_p12, %p843_p4 }
  0x45   : > { %851 = shalt.err (!%p848_p11)
}
  0x46   : > { %s988_s16 = smov 128   ;;  %s989_s18 = smov 8  }
  0x47   : > { %s1325_s20 = sshll.u32 %s1340_s17, 7 }
  0x48   : > { %265 = dma.hbm_to_vmem [thread:$0]  (%p1116_p7), %s1127_s12, %s1325_s20, %s260_s4, %s1113_s19, %s988_s16, %s988_s16, %s989_s18  }
  0x49 PF: > { %268 = sbr.rel (!%p1070_p5) target bundleno = 109 (0x6d), region = 40  ;;  %s269_s30 = sand.u32 (%p1070_p5), 1, %s981_s24  }
  0x4a   : > { %s271_s15 = sand.u32 (%p1070_p5), 1, %s977_s23   ;;  %s627_s13 = sshll.u32 (%p1070_p5), %s981_s24, 1 }
  0x4b   : > { %s626_s14 = sshll.u32 (%p1070_p5), %s271_s15, 4  ;;  %s275_s2 = ssub.s32 (%p1070_p5), 5, %s627_s13 }
  0x4c   : > { %p276_p4 = scmp.lt.s32.totalorder (%p1070_p5), %s275_s2, 2  ;;  %s1161_s4 = scalar_lea.sflag (%p1070_p5), [#allocation6], %s269_s30 }
  0x4d   : > { %s273_s7 = scalar_lea.vmem (%p1070_p5), [#allocation5], %s626_s14 }
  0x4e   : > { %s1342_s2 = smov (!%p276_p4, %s275_s2), 2 }
  0x4f   : > { %s628_s26 = sshll.u32 %s1342_s2, 3 }
  0x50   : > { %s279_s29 = ssub.s32 16, %s628_s26 }
  0x51   : > { %s280_s17 = sshll.u32 %s279_s29, 4 }
  0x52   : > { %281 = vsyncadd %s1161_s4, %s280_s17  ;;  %p1164_p5 = scmp.ne.s32.totalorder %s628_s26, 0  ;;  %s649_s12 = sshll.u32 %s981_s24, 4 }
  0x53   : > { %s284_s18 = scalar_lea.hbm %s1306_s1, %s649_s12  ;;  %s1172_s20 = sshll.u32 %s273_s7, 4  ;;  %s289_s20 = int_to_ptr.vmem [resolvable:$true] %s1172_s20 }
  0x54   : > { %s286_s30 = sshll.u32 %s284_s18, 4  ;;  %s632_s15 = sshll.u32 %s1342_s2, 7  ;;  %s1175_s30 = int_to_ptr.hbm [resolvable:$true] %s286_s30 }
  0x55   : > { %s853_s14 = sshra.s32 %s1175_s30, 4  ;;  %s855_s13 = sshrl.u32 %s632_s15, 4  ;;  %s854_s14 = int_to_ptr.hbm [resolvable:$true] %s853_s14 }
  0x56   : > { %s860_s26 = scalar_lea.hbm %s854_s14, %s855_s13  ;;  %s864_s7 = scalar_lea.hbm %s1306_s1, 40 }
  0x57   : > { %p861_p11 = scmp.ne.s32.totalorder %s854_s14, %s860_s26  ;;  %p865_p10 = scmp.lt.s32.totalorder %s854_s14, %s1306_s1 }
  0x58   : > { %p866_p1 = scmp.lt.s32.totalorder %s864_s7, %s860_s26 }
  0x59   : > { %p862_p12 = pnand %p861_p11, %p1164_p5 }
  0x5a   : > { %p867_p0 = por %p866_p1, %p865_p10 }
  0x5b   : > { %p863_p7 = pneg %p862_p12 }
  0x5d   : > { %p868_p2 = pnand %p867_p0, %p863_p7 }
  0x5f   : > { %871 = shalt.err (!%p868_p2)
}
  0x60   : > { %s872_s16 = sshra.s32 %s289_s20, 4  ;;  %s990_s29 = smov [#allocation5]   ;;  %s873_s16 = int_to_ptr.vmem [resolvable:$true] %s872_s16 }
  0x61   : > { %s879_s18 = scalar_lea.vmem %s873_s16, %s855_s13  ;;  %s883_s17 = scalar_lea.vmem %s990_s29, 32 }
  0x62   : > { %p880_p3 = scmp.ne.s32.totalorder %s873_s16, %s879_s18  ;;  %p885_p4 = scmp.lt.s32.totalorder %s883_s17, %s879_s18 }
  0x64   : > { %p881_p8 = pnand %p880_p3, %p1164_p5 }
  0x66   : > { %p882_p9 = pneg %p881_p8 }
  0x68   : > { %p887_p11 = pnand %p885_p4, %p882_p9 }
  0x6a   : > { %890 = shalt.err (!%p887_p11)
}
  0x6b   : > { %s991_s14 = smov 128   ;;  %s992_s26 = smov 8  }
  0x6c   : > { %294 = dma.hbm_to_vmem [thread:$0]  (%p1164_p5), %s1175_s30, %s632_s15, %s289_s20, %s1161_s4, %s991_s14, %s991_s14, %s992_s26  }
  0x6d PF: > { %300 = sbr.rel (%p1091_p13) target bundleno = 330 (0x14a), region = 44  ;;  %s1204_s13 = sand.u32 (!%p1091_p13), 1, %s973_s22  }
  0x6e   : > { %s1207_s7 = sshll.u32 (!%p1091_p13), %s1204_s13, 4  ;;  %s303_s12 = scalar_lea.sflag (!%p1091_p13), [#allocation3], %s1204_s13 }
  0x6f   : > { %s306_s28 = scalar_lea.vmem (!%p1091_p13), [#allocation2], %s1207_s7 }
  0x72   : > { %948 = dma.done.wait (%p1076_p6), %s303_s12, 256  }
  0x73   : > { %950 = vsyncadd (%p1076_p6), %s303_s12, 4294967040  ;;  %s312_s11 = sand.u32 1, %s1052_s25   ;;  %s316_s4 = scalar_lea.vmem [#allocation5], %s1207_s7 }
  0x74   : > { %s313_s2 = scalar_lea.sflag [#allocation6], %s312_s11 }
  0x75   : > { %952 = dma.done.wait (%p1076_p6), %s313_s2, 256  }
  0x76   : > { %954 = vsyncadd (%p1076_p6), %s313_s2, 4294967040  ;;  %p1327_p13 = scmp.eq.s32.totalorder %s1052_s25, 0 }
  0x78   : > { %956 = dma.done.wait (%p1327_p13), [#allocation6], 2048   ;;  %p1328_p5 = pmov %p1327_p13 }
  0x7a   : > { %958 = vsyncadd (%p1328_p5), [#allocation6], 4294965248  ;;  %p1329_p12 = pmov %p1328_p5 }
  0x7b   : > { %p1330_p7 = pmov %p1328_p5 }
  0x7c   : > { %960 = dma.done.wait (%p1329_p12), [#allocation9], 2048  }
  0x7d   : > { %962 = vsyncadd (%p1330_p7), [#allocation9], 4294965248  ;;  %v393_v0 = vld [vmem:[#allocation7 + $0x78] sm:$0xff]  ;;  %v392_v2 = vld [vmem:[#allocation7 + $0x70] sm:$0xff]  ;;  %s360_s15 = scalar_lea.vmem [#allocation10], %s1207_s7  ;;  %s477_s16 = scalar_lea.sflag [#allocation4], %s1204_s13 }
  0x7e   : > { %v438_v1 = vld [vmem:[#allocation8 + $0x78] sm:$0xff]  ;;  %651 = vmatpush.msra.mxu2 %v393_v0  ;;  %v437_v3 = vld [vmem:[#allocation8 + $0x70] sm:$0xff]  ;;  %v391_v4 = vld [vmem:[#allocation7 + $0x68] sm:$0xff]  ;;  %398 = vmatpush.msra.mxu0 %v393_v0  ;;  %p1331_p6 = scmp.ne.s32.totalorder %s1319_s9, 0 }
  0x7f   : > { %667 = vmatpush.msra.mxu3 %v438_v1  ;;  %v436_v5 = vld [vmem:[#allocation8 + $0x68] sm:$0xff]  ;;  %443 = vmatpush.msra.mxu1 %v438_v1  ;;  %v390_v6 = vld [vmem:[#allocation7 + $0x60] sm:$0xff]  ;;  %v389_v8 = vld [vmem:[#allocation7 + $0x58] sm:$0xff]  ;;  %s640_s18 = sshll.u32 (%p1331_p6), %s1052_s25, 1 }
  0x80   : > { %652 = vmatpush.msra.mxu2 %v392_v2  ;;  %v435_v7 = vld [vmem:[#allocation8 + $0x60] sm:$0xff]  ;;  %399 = vmatpush.msra.mxu0 %v392_v2  ;;  %v434_v9 = vld [vmem:[#allocation8 + $0x58] sm:$0xff]  ;;  %v388_v10 = vld [vmem:[#allocation7 + $0x50] sm:$0xff]  ;;  %s485_s29 = ssub.s32 (%p1331_p6), 5, %s640_s18 }
  0x81   : > { %668 = vmatpush.msra.mxu3 %v437_v3  ;;  %444 = vmatpush.msra.mxu1 %v437_v3  ;;  %v433_v11 = vld [vmem:[#allocation8 + $0x50] sm:$0xff]  ;;  %v387_v12 = vld [vmem:[#allocation7 + $0x48] sm:$0xff]  ;;  %v386_v14 = vld [vmem:[#allocation7 + $0x40] sm:$0xff]  ;;  %p486_p10 = scmp.lt.s32.totalorder (%p1331_p6), %s485_s29, 2 }
  0x82   : > { %653 = vmatpush.msra.mxu2 %v391_v4  ;;  %400 = vmatpush.msra.mxu0 %v391_v4  ;;  %v432_v13 = vld [vmem:[#allocation8 + $0x48] sm:$0xff]  ;;  %v431_v15 = vld [vmem:[#allocation8 + $0x40] sm:$0xff]  ;;  %v385_v16 = vld [vmem:[#allocation7 + $0x38] sm:$0xff] }
  0x83   : > { %669 = vmatpush.msra.mxu3 %v436_v5  ;;  %445 = vmatpush.msra.mxu1 %v436_v5  ;;  %v430_v17 = vld [vmem:[#allocation8 + $0x38] sm:$0xff]  ;;  %v384_v18 = vld [vmem:[#allocation7 + $0x30] sm:$0xff]  ;;  %v383_v20 = vld [vmem:[#allocation7 + $0x28] sm:$0xff] }
  0x84   : > { %654 = vmatpush.msra.mxu2 %v390_v6  ;;  %401 = vmatpush.msra.mxu0 %v390_v6  ;;  %v429_v19 = vld [vmem:[#allocation8 + $0x30] sm:$0xff]  ;;  %v428_v21 = vld [vmem:[#allocation8 + $0x28] sm:$0xff]  ;;  %v382_v22 = vld [vmem:[#allocation7 + $0x20] sm:$0xff] }
  0x85   : > { %670 = vmatpush.msra.mxu3 %v435_v7  ;;  %446 = vmatpush.msra.mxu1 %v435_v7  ;;  %v427_v23 = vld [vmem:[#allocation8 + $0x20] sm:$0xff]  ;;  %v381_v24 = vld [vmem:[#allocation7 + $0x18] sm:$0xff]  ;;  %v380_v26 = vld [vmem:[#allocation7 + $0x10] sm:$0xff] }
  0x86   : > { %655 = vmatpush.msra.mxu2 %v389_v8  ;;  %402 = vmatpush.msra.mxu0 %v389_v8  ;;  %v426_v25 = vld [vmem:[#allocation8 + $0x18] sm:$0xff]  ;;  %v425_v27 = vld [vmem:[#allocation8 + $0x10] sm:$0xff]  ;;  %v379_v28 = vld [vmem:[#allocation7 + $0x8] sm:$0xff] }
  0x87   : > { %671 = vmatpush.msra.mxu3 %v434_v9  ;;  %447 = vmatpush.msra.mxu1 %v434_v9  ;;  %v424_v29 = vld [vmem:[#allocation8 + $0x8] sm:$0xff]  ;;  %v378_v30 = vld [vmem:[#allocation7] sm:$0xff] }
  0x88   : > { %656 = vmatpush.msra.mxu2 %v388_v10  ;;  %403 = vmatpush.msra.mxu0 %v388_v10  ;;  %v423_v31 = vld [vmem:[#allocation8] sm:$0xff]  ;;  %v377_v32 = vld [vmem:[%s306_s28 + $0x8] sm:$0xff] }
  0x89   : > { %672 = vmatpush.msra.mxu3 %v433_v11  ;;  %448 = vmatpush.msra.mxu1 %v433_v11  ;;  %v422_v33 = vld [vmem:[%s316_s4 + $0x8] sm:$0xff]  ;;  %v376_v34 = vld [vmem:[%s306_s28] sm:$0xff] }
  0x8a   : > { %657 = vmatpush.msra.mxu2 %v387_v12  ;;  %404 = vmatpush.msra.mxu0 %v387_v12  ;;  %v421_v35 = vld [vmem:[%s316_s4] sm:$0xff] }
  0x8b   : > { %673 = vmatpush.msra.mxu3 %v432_v13  ;;  %449 = vmatpush.msra.mxu1 %v432_v13  ;;  %v752_v36 = vld [vmem:[%s1308_s3] ss:$0 sm:$0xff] }
  0x8c   : > { %658 = vmatpush.msra.mxu2 %v386_v14  ;;  %405 = vmatpush.msra.mxu0 %v386_v14  ;;  %v753_v37 = vld [vmem:[%s1310_s5] ss:$0 sm:$0xff] }
  0x8d   : > { %674 = vmatpush.msra.mxu3 %v431_v15  ;;  %450 = vmatpush.msra.mxu1 %v431_v15 }
  0x8e   : > { %659 = vmatpush.msra.mxu2 %v385_v16  ;;  %406 = vmatpush.msra.mxu0 %v385_v16 }
  0x8f   : > { %675 = vmatpush.msra.mxu3 %v430_v17  ;;  %451 = vmatpush.msra.mxu1 %v430_v17 }
  0x90   : > { %660 = vmatpush.msra.mxu2 %v384_v18  ;;  %407 = vmatpush.msra.mxu0 %v384_v18 }
  0x91   : > { %676 = vmatpush.msra.mxu3 %v429_v19  ;;  %452 = vmatpush.msra.mxu1 %v429_v19 }
  0x92   : > { %661 = vmatpush.msra.mxu2 %v383_v20  ;;  %408 = vmatpush.msra.mxu0 %v383_v20 }
  0x93   : > { %677 = vmatpush.msra.mxu3 %v428_v21  ;;  %453 = vmatpush.msra.mxu1 %v428_v21 }
  0x94   : > { %662 = vmatpush.msra.mxu2 %v382_v22  ;;  %409 = vmatpush.msra.mxu0 %v382_v22 }
  0x95   : > { %678 = vmatpush.msra.mxu3 %v427_v23  ;;  %454 = vmatpush.msra.mxu1 %v427_v23 }
  0x96   : > { %663 = vmatpush.msra.mxu2 %v381_v24  ;;  %410 = vmatpush.msra.mxu0 %v381_v24 }
  0x97   : > { %679 = vmatpush.msra.mxu3 %v426_v25  ;;  %455 = vmatpush.msra.mxu1 %v426_v25 }
  0x98   : > { %664 = vmatpush.msra.mxu2 %v380_v26  ;;  %411 = vmatpush.msra.mxu0 %v380_v26 }
  0x99   : > { %680 = vmatpush.msra.mxu3 %v425_v27  ;;  %456 = vmatpush.msra.mxu1 %v425_v27 }
  0x9a   : > { %665 = vmatpush.msra.mxu2 %v379_v28  ;;  %412 = vmatpush.msra.mxu0 %v379_v28 }
  0x9b   : > { %681 = vmatpush.msra.mxu3 %v424_v29  ;;  %457 = vmatpush.msra.mxu1 %v424_v29 }
  0x9c   : > { %666 = vmatpush.msra.mxu2 %v378_v30  ;;  %413 = vmatpush.msra.mxu0 %v378_v30 }
  0x9d   : > { %682 = vmatpush.msra.mxu3 %v423_v31  ;;  %417 = vmatmul.f32.vlgmr.msra.gmra.mxu2 %v377_v32 }
  0x9e   : > { %462 = vmatmul.f32.vlgmr.msra.gmra.mxu3 %v422_v33  ;;  %458 = vmatpush.msra.mxu1 %v423_v31 }
  0x9f   : > { %414 = vmatmul.f32.vlgmr.msra.gmra.mxu0 %v376_v34  ;;  %459 = vmatmul.f32.vlgmr.msra.gmra.mxu1 %v421_v35 }
 0x11c   : > { %v415_v38 = vpop.f32.mrf.mxu0  ;;  %v460_v39 = vpop.f32.mrf.mxu1 }
 0x11d   : > { %v416_v40 = vadd.f32 %v752_v36, %v415_v38  ;;  %v461_v41 = vadd.f32 %v753_v37, %v460_v39 }
 0x11f   : > { %v466_v42 = vmax.f32 %v416_v40, 0.0  ;;  %v468_v43 = vmax.f32 %v461_v41, 0.0 }
 0x120   : > { %v418_v44 = vpop.f32.mrf.mxu2 }
 0x121   : > { %v463_v45 = vpop.f32.mrf.mxu3  ;;  %v419_v46 = vadd.f32 %v752_v36, %v418_v44  ;;  %v470_v47 = vadd.f32 %v468_v43, %v466_v42 }
 0x122   : > { %v464_v48 = vadd.f32 %v753_v37, %v463_v45 }
 0x123   : > { %v467_v49 = vmax.f32 %v419_v46, 0.0  ;;  %v472_v50 = vadd.f32 %v470_v47, %v376_v34 }
 0x124   : > { %v469_v51 = vmax.f32 %v464_v48, 0.0 }
 0x125   : > { %474 = vst [vmem:[%s360_s15] sm:$0xff] %v472_v50 }
 0x126   : > { %v471_v52 = vadd.f32 %v469_v51, %v467_v49  ;;  %483 = sbr.rel (!%p1331_p6) target bundleno = 330 (0x14a), region = 64 }
 0x128   : > { %v473_v53 = vadd.f32 %v471_v52, %v377_v32 }
 0x12a   : > { %475 = vst [vmem:[%s360_s15 + $0x8] sm:$0xff] %v473_v53 }
 0x12b   : > { %s1344_s29 = smov (!%p486_p10, %s485_s29), 2 }
 0x12c   : > { %s641_s17 = sshll.u32 %s1344_s29, 3 }
 0x12d   : > { %s489_s14 = ssub.s32 16, %s641_s17 }
 0x12e   : > { %s490_s26 = sshll.u32 %s489_s14, 4 }
 0x12f   : > { %491 = vsyncadd %s477_s16, %s490_s26  ;;  %p1253_p1 = scmp.ne.s32.totalorder %s641_s17, 0  ;;  %s650_s9 = sshll.u32 %s1052_s25, 4 }
 0x130   : > { %s494_s11 = scalar_lea.hbm %s1311_s6, %s650_s9  ;;  %s496_s2 = sshll.u32 %s360_s15, 4  ;;  %s1261_s2 = int_to_ptr.vmem [resolvable:$true] %s496_s2 }
 0x131   : > { %s498_s4 = sshll.u32 %s494_s11, 4  ;;  %s645_s8 = sshll.u32 %s1344_s29, 7  ;;  %s1263_s4 = int_to_ptr.hbm [resolvable:$true] %s498_s4 }
 0x132   : > { %s892_s19 = sshra.s32 %s1261_s2, 4  ;;  %s894_s20 = sshrl.u32 %s645_s8, 4  ;;  %s893_s19 = int_to_ptr.vmem [resolvable:$true] %s892_s19 }
 0x133   : > { %s899_s30 = scalar_lea.vmem %s893_s19, %s894_s20  ;;  %s993_s25 = smov [#allocation10]  }
 0x134   : > { %p900_p0 = scmp.ne.s32.totalorder %s893_s19, %s899_s30  ;;  %s903_s18 = scalar_lea.vmem %s993_s25, 32 }
 0x135   : > { %p905_p8 = scmp.lt.s32.totalorder %s903_s18, %s899_s30 }
 0x136   : > { %p901_p2 = pnand %p900_p0, %p1253_p1 }
 0x138   : > { %p902_p3 = pneg %p901_p2 }
 0x13a   : > { %p907_p9 = pnand %p905_p8, %p902_p3 }
 0x13c   : > { %910 = shalt.err (!%p907_p9)
}
 0x13d   : > { %s911_s15 = sshra.s32 %s1263_s4, 4  ;;  %s922_s9 = scalar_lea.hbm %s1311_s6, 40  ;;  %s912_s15 = int_to_ptr.hbm [resolvable:$true] %s911_s15 }
 0x13e   : > { %s918_s17 = scalar_lea.hbm %s912_s15, %s894_s20  ;;  %p923_p5 = scmp.lt.s32.totalorder %s912_s15, %s1311_s6 }
 0x13f   : > { %p919_p4 = scmp.ne.s32.totalorder %s912_s15, %s918_s17  ;;  %p924_p12 = scmp.lt.s32.totalorder %s922_s9, %s918_s17 }
 0x141   : > { %p920_p11 = pnand %p919_p4, %p1253_p1  ;;  %p925_p7 = por %p924_p12, %p923_p5 }
 0x143   : > { %p921_p13 = pneg %p920_p11 }
 0x145   : > { %p926_p6 = pnand %p925_p7, %p921_p13 }
 0x147   : > { %929 = shalt.err (!%p926_p6)
}
 0x148   : > { %s994_s11 = smov 128   ;;  %s995_s19 = smov 8  }
 0x149   : > { %504 = dma.vmem_to_hbm [thread:$0]  (%p1253_p1), %s1261_s2, %s645_s8, %s1263_s4, %s477_s16, %s994_s11, %s994_s11, %s995_s19  }
 0x14a PF: > { %p709_p10 = scmp.ge.s32.totalorder %s981_s24, 2  ;;  %s513_s20 = sand.u32 1, %s969_s21  }
 0x14b   : > { %p1333_p0 = scmp.ne.s32.totalorder %s1320_s10, 0  ;;  %s514_s30 = scalar_lea.sflag [#allocation4], %s513_s20 }
 0x14d   : > { %p702_p2 = pnand %p709_p10, %p1333_p0 }
 0x14f   : > { %p703_p3 = pneg %p702_p2 }
 0x151   : > { %964 = dma.done.wait (%p703_p3), %s514_s30, 256  }
 0x152   : > { %966 = vsyncadd (%p703_p3), %s514_s30, 4294967040  ;;  %s1334_s7 = sld [smem:[#allocation16_spill]]  ;;  %p23_p8 = scmp.ge.s32.totalorder %s1056_s27, 5  }
 0x153   : > { %s1335_s21 = smov %s973_s22  ;;  %s1336_s22 = smov %s977_s23 }
 0x154   : > { %s1338_s24 = smov %s1056_s27  ;;  %25 = sbr.rel (!%p23_p8) target bundleno = 11 (0xb), region = 110 }
 0x158   : > { %s1337_s23 = smov %s1334_s7 }
 0x159   :  { %520 = vsyncpa [#allocation3], 1 }
 0x15a   :  { %522 = vsyncpa [#allocation3 + $0x1], 1 }
 0x15b   :  { %523 = vsyncpa [#allocation6], 1 }
 0x15c   :  { %525 = vsyncpa [#allocation6 + $0x1], 1 }
 0x15d   :  { %526 = vsyncpa [#allocation9], 1 }
 0x15e   :  { %527 = vsyncpa [#allocation4], 1 }
 0x15f   :  { %529 = vsyncpa [#allocation4 + $0x1], 1 }

</bundles_post_ra>
